<compile_context>
chip_gen: v5e
topology: v5e:2x2
jax: 0.10.0
libtpu: 0.0.40
codegen_flags: <defaults>
</compile_context>

<pallas_src>
import jax
import jax.numpy as jnp
from jax.experimental import pallas as pl
from jax.experimental.pallas import tpu as pltpu

HIDDEN = 128     # hidden width of the DQN MLP
OUT_PAD = 128    # lane-dense padded output width (real out_dim sliced in wrapper)
IN_PAD = 8       # input feature dim padded 4 -> 8 for aligned bf16 loads
SUBLANE = 16     # bf16 sublane packing (rows per vreg)


def dqn_kernel(x_ref, w1_ref, b1_ref, w2_ref, b2_ref, w3_ref, b3_ref, o_ref):
    # Layer 1: Linear(in, 128) + ReLU  (bf16 operands, f32 accumulate)
    h1 = jnp.dot(x_ref[...], w1_ref[...], preferred_element_type=jnp.float32)
    h1 = jnp.maximum(h1 + b1_ref[...], 0.0)
    # Layer 2: Linear(128, 128) + ReLU
    h2 = jnp.dot(h1.astype(jnp.bfloat16), w2_ref[...],
                 preferred_element_type=jnp.float32)
    h2 = jnp.maximum(h2 + b2_ref[...], 0.0)
    # Layer 3: Linear(128, OUT_PAD)  (zero-padded cols; lane-dense bf16 store)
    out = jnp.dot(h2.astype(jnp.bfloat16), w3_ref[...],
                  preferred_element_type=jnp.float32)
    o_ref[...] = (out + b3_ref[...]).astype(o_ref.dtype)


def _choose_tile(batch):
    """Batch-tile rows: tiny for acting-sized batches, 128/256 for replay batches."""
    if batch <= 128:
        # round up to the bf16 sublane multiple (16) -> single small grid step
        return ((batch + SUBLANE - 1) // SUBLANE) * SUBLANE
    if batch >= 512:
        # v6e/v7x: bigger tiles amortize the ~0.35us per-step overhead and
        # still leave >= 2 grid steps so both v7x TensorCores are used.
        return 256
    return 128


def prepare_params(params):
    """One-time weight prep (bf16 cast + zero padding). Redo only when params change."""
    in_dim = params["w1"].shape[0]
    out_dim = params["w3"].shape[1]
    w1 = jnp.pad(params["w1"], ((0, IN_PAD - in_dim), (0, 0))).astype(jnp.bfloat16)
    w2 = params["w2"].astype(jnp.bfloat16)
    w3 = jnp.pad(params["w3"], ((0, 0), (0, OUT_PAD - out_dim))).astype(jnp.bfloat16)
    b1 = params["b1"].astype(jnp.float32)
    b2 = params["b2"].astype(jnp.float32)
    b3 = jnp.pad(params["b3"], ((0, 0), (0, OUT_PAD - out_dim))).astype(jnp.float32)
    return {"w1": w1, "b1": b1, "w2": w2, "b2": b2, "w3": w3, "b3": b3,
            "out_dim": out_dim}


def dqn_forward(x, prep):
    """x: [B, input_dim] float32; prep: output of prepare_params()."""
    B, in_dim = x.shape
    out_dim = prep["out_dim"]

    tile_b = _choose_tile(B)
    B_pad = ((B + tile_b - 1) // tile_b) * tile_b
    nb = B_pad // tile_b

    # Pad batch to the tile multiple and the feature dim to IN_PAD; cast to bf16.
    x_p = jnp.pad(x, ((0, B_pad - B), (0, IN_PAD - in_dim))).astype(jnp.bfloat16)

    w1, b1 = prep["w1"], prep["b1"]
    w2, b2 = prep["w2"], prep["b2"]
    w3, b3 = prep["w3"], prep["b3"]

    # Weights/biases: whole-array blocks with constant index_map -> VMEM-resident.
    resident = lambda a: pl.BlockSpec(a.shape, lambda i: (0,) * a.ndim)

    flops = 2 * B_pad * (IN_PAD * HIDDEN + HIDDEN * HIDDEN + HIDDEN * OUT_PAD)
    bytes_accessed = (x_p.size * 2
                      + w1.size * 2 + w2.size * 2 + w3.size * 2
                      + b1.size * 4 + b2.size * 4 + b3.size * 4
                      + B_pad * OUT_PAD * 2)

    out_p = pl.pallas_call(
        dqn_kernel,
        out_shape=jax.ShapeDtypeStruct((B_pad, OUT_PAD), jnp.bfloat16),
        grid=(nb,),
        in_specs=[pl.BlockSpec((tile_b, IN_PAD), lambda i: (i, 0)),
                  resident(w1), resident(b1),
                  resident(w2), resident(b2),
                  resident(w3), resident(b3)],
        out_specs=pl.BlockSpec((tile_b, OUT_PAD), lambda i: (i, 0)),
        compiler_params=pltpu.CompilerParams(
            dimension_semantics=("parallel",)),
        cost_estimate=pl.CostEstimate(
            flops=flops, transcendentals=0, bytes_accessed=bytes_accessed),
    )(x_p, w1, b1, w2, b2, w3, b3)

    # Drop batch padding / padded output lanes; restore f32 on the tiny payload.
    return out_p[:B, :out_dim].astype(jnp.float32)


def init_params(key, input_dim, hidden_dim, output_dim):
    """Deterministic synthetic parameters (PyTorch-Linear-like uniform init)."""
    ks = jax.random.split(key, 6)

    def lin(kw, kb, fan_in, fan_out):
        bound = 1.0 / jnp.sqrt(fan_in)
        # stored as [in, out] so the kernel computes x @ W + b (== x @ W_pt.T + b)
        w = jax.random.uniform(kw, (fan_in, fan_out), jnp.float32, -bound, bound)
        b = jax.random.uniform(kb, (1, fan_out), jnp.float32, -bound, bound)
        return w, b

    w1, b1 = lin(ks[0], ks[1], input_dim, hidden_dim)
    w2, b2 = lin(ks[2], ks[3], hidden_dim, hidden_dim)
    w3, b3 = lin(ks[4], ks[5], hidden_dim, output_dim)
    return {"w1": w1, "b1": b1, "w2": w2, "b2": b2, "w3": w3, "b3": b3}


if __name__ == "__main__":
    key = jax.random.PRNGKey(0)
    k_x, k_p = jax.random.split(key)

    batch = 8
    input_dim = 4     # CartPole observation dim
    hidden_dim = 128
    output_dim = 2    # CartPole action dim

    x = jax.random.normal(k_x, (batch, input_dim), dtype=jnp.float32)
    params = init_params(k_p, input_dim, hidden_dim, output_dim)
    prep = prepare_params(params)          # one-time weight prep (hoisted)

    out = dqn_forward(x, prep)
    out = jax.block_until_ready(out)
    assert out.shape == (batch, output_dim)

    # Pure-JAX reference with matching bf16 matmul operands / f32 accumulation.
    xb = x.astype(jnp.bfloat16)
    w1b = params["w1"].astype(jnp.bfloat16)
    w2b = params["w2"].astype(jnp.bfloat16)
    w3b = params["w3"].astype(jnp.bfloat16)
    h1 = jnp.maximum(jnp.dot(xb, w1b, preferred_element_type=jnp.float32)
                     + params["b1"], 0.0)
    h2 = jnp.maximum(jnp.dot(h1.astype(jnp.bfloat16), w2b,
                             preferred_element_type=jnp.float32)
                     + params["b2"], 0.0)
    ref = (jnp.dot(h2.astype(jnp.bfloat16), w3b,
                   preferred_element_type=jnp.float32) + params["b3"])
    # Kernel output is stored as bf16 -> allow bf16-rounding-sized tolerance.
    assert jnp.allclose(out, ref, atol=2e-2, rtol=2e-2)

    print("KERNEL_OK")
</pallas_src>

<mosaic_0001>
module attributes {stable_mosaic.version = 11 : i64} {
  func.func @dqn_kernel(%arg0: i32, %arg1: memref<16x8xbf16, #tpu.memory_space<vmem>>, %arg2: memref<8x128xbf16, #tpu.memory_space<vmem>>, %arg3: memref<1x128xf32, #tpu.memory_space<vmem>>, %arg4: memref<128x128xbf16, #tpu.memory_space<vmem>>, %arg5: memref<1x128xf32, #tpu.memory_space<vmem>>, %arg6: memref<128x128xbf16, #tpu.memory_space<vmem>>, %arg7: memref<1x128xf32, #tpu.memory_space<vmem>>, %arg8: memref<16x128xbf16, #tpu.memory_space<vmem>>) attributes {dimension_semantics = [#tpu.dimension_semantics<parallel>], iteration_bounds = array<i64: 1>, scalar_prefetch = 0 : i64, scratch_operands = 0 : i64, tpu.core_type = #tpu.core_type<tc>, window_params = [{transform_indices = @transform_0, window_bounds = array<i64: 16, 8>}, {pipeline_mode = #tpu.pipeline_mode<synchronous>, transform_indices = @transform_1, window_bounds = array<i64: 8, 128>}, {pipeline_mode = #tpu.pipeline_mode<synchronous>, transform_indices = @transform_2, window_bounds = array<i64: 1, 128>}, {pipeline_mode = #tpu.pipeline_mode<synchronous>, transform_indices = @transform_3, window_bounds = array<i64: 128, 128>}, {pipeline_mode = #tpu.pipeline_mode<synchronous>, transform_indices = @transform_4, window_bounds = array<i64: 1, 128>}, {pipeline_mode = #tpu.pipeline_mode<synchronous>, transform_indices = @transform_5, window_bounds = array<i64: 128, 128>}, {pipeline_mode = #tpu.pipeline_mode<synchronous>, transform_indices = @transform_6, window_bounds = array<i64: 1, 128>}, {transform_indices = @transform_7, window_bounds = array<i64: 16, 128>}]} {
    %c0 = arith.constant 0 : index
    %c0_0 = arith.constant 0 : index
    %0 = vector.load %arg1[%c0, %c0_0] : memref<16x8xbf16, #tpu.memory_space<vmem>>, vector<16x8xbf16>
    %c0_1 = arith.constant 0 : index
    %c0_2 = arith.constant 0 : index
    %1 = vector.load %arg2[%c0_1, %c0_2] : memref<8x128xbf16, #tpu.memory_space<vmem>>, vector<8x128xbf16>
    %cst = arith.constant dense<0.000000e+00> : vector<16x128xf32>
    %2 = tpu.matmul %0, %1, %cst {dimension_numbers = #tpu.dot_dimension_numbers<[1], [0], [0], [1], [0, 0, 1, 1], [], []>} : vector<16x8xbf16>, vector<8x128xbf16>, vector<16x128xf32> -> vector<16x128xf32>
    %c0_3 = arith.constant 0 : index
    %c0_4 = arith.constant 0 : index
    %3 = vector.load %arg3[%c0_3, %c0_4] : memref<1x128xf32, #tpu.memory_space<vmem>>, vector<1x128xf32>
    %4 = vector.broadcast %3 : vector<1x128xf32> to vector<16x128xf32>
    %5 = arith.addf %2, %4 : vector<16x128xf32>
    %cst_5 = arith.constant 0.000000e+00 : f32
    %6 = vector.broadcast %cst_5 : f32 to vector<16x128xf32>
    %7 = arith.maximumf %5, %6 : vector<16x128xf32>
    %8 = arith.truncf %7 : vector<16x128xf32> to vector<16x128xbf16>
    %c0_6 = arith.constant 0 : index
    %c0_7 = arith.constant 0 : index
    %9 = vector.load %arg4[%c0_6, %c0_7] : memref<128x128xbf16, #tpu.memory_space<vmem>>, vector<128x128xbf16>
    %cst_8 = arith.constant dense<0.000000e+00> : vector<16x128xf32>
    %10 = tpu.matmul %8, %9, %cst_8 {dimension_numbers = #tpu.dot_dimension_numbers<[1], [0], [0], [1], [0, 0, 1, 1], [], []>} : vector<16x128xbf16>, vector<128x128xbf16>, vector<16x128xf32> -> vector<16x128xf32>
    %c0_9 = arith.constant 0 : index
    %c0_10 = arith.constant 0 : index
    %11 = vector.load %arg5[%c0_9, %c0_10] : memref<1x128xf32, #tpu.memory_space<vmem>>, vector<1x128xf32>
    %12 = vector.broadcast %11 : vector<1x128xf32> to vector<16x128xf32>
    %13 = arith.addf %10, %12 : vector<16x128xf32>
    %cst_11 = arith.constant 0.000000e+00 : f32
    %14 = vector.broadcast %cst_11 : f32 to vector<16x128xf32>
    %15 = arith.maximumf %13, %14 : vector<16x128xf32>
    %16 = arith.truncf %15 : vector<16x128xf32> to vector<16x128xbf16>
    %c0_12 = arith.constant 0 : index
    %c0_13 = arith.constant 0 : index
    %17 = vector.load %arg6[%c0_12, %c0_13] : memref<128x128xbf16, #tpu.memory_space<vmem>>, vector<128x128xbf16>
    %cst_14 = arith.constant dense<0.000000e+00> : vector<16x128xf32>
    %18 = tpu.matmul %16, %17, %cst_14 {dimension_numbers = #tpu.dot_dimension_numbers<[1], [0], [0], [1], [0, 0, 1, 1], [], []>} : vector<16x128xbf16>, vector<128x128xbf16>, vector<16x128xf32> -> vector<16x128xf32>
    %c0_15 = arith.constant 0 : index
    %c0_16 = arith.constant 0 : index
    %19 = vector.load %arg7[%c0_15, %c0_16] : memref<1x128xf32, #tpu.memory_space<vmem>>, vector<1x128xf32>
    %20 = vector.broadcast %19 : vector<1x128xf32> to vector<16x128xf32>
    %21 = arith.addf %18, %20 : vector<16x128xf32>
    %22 = arith.truncf %21 : vector<16x128xf32> to vector<16x128xbf16>
    %c0_17 = arith.constant 0 : index
    %c0_18 = arith.constant 0 : index
    %23 = vector.load %arg8[%c0_17, %c0_18] : memref<16x128xbf16, #tpu.memory_space<vmem>>, vector<16x128xbf16>
    tpu.vector_store %arg8[%c0_17, %c0_18], %22 {strides = array<i32>} : memref<16x128xbf16, #tpu.memory_space<vmem>>, vector<16x128xbf16>,
    return
  }
  func.func @transform_0(%arg0: i32) -> (i32, i32) {
    %c0_i32 = arith.constant 0 : i32
    %c0_i32_0 = arith.constant 0 : i32
    return %arg0, %c0_i32 : i32, i32
  }
  func.func @transform_1(%arg0: i32) -> (i32, i32) {
    %c0_i32 = arith.constant 0 : i32
    %c0_i32_0 = arith.constant 0 : i32
    %c0_i32_1 = arith.constant 0 : i32
    return %c0_i32, %c0_i32_0 : i32, i32
  }
  func.func @transform_2(%arg0: i32) -> (i32, i32) {
    %c0_i32 = arith.constant 0 : i32
    %c0_i32_0 = arith.constant 0 : i32
    %c0_i32_1 = arith.constant 0 : i32
    return %c0_i32, %c0_i32_0 : i32, i32
  }
  func.func @transform_3(%arg0: i32) -> (i32, i32) {
    %c0_i32 = arith.constant 0 : i32
    %c0_i32_0 = arith.constant 0 : i32
    %c0_i32_1 = arith.constant 0 : i32
    return %c0_i32, %c0_i32_0 : i32, i32
  }
  func.func @transform_4(%arg0: i32) -> (i32, i32) {
    %c0_i32 = arith.constant 0 : i32
    %c0_i32_0 = arith.constant 0 : i32
    %c0_i32_1 = arith.constant 0 : i32
    return %c0_i32, %c0_i32_0 : i32, i32
  }
  func.func @transform_5(%arg0: i32) -> (i32, i32) {
    %c0_i32 = arith.constant 0 : i32
    %c0_i32_0 = arith.constant 0 : i32
    %c0_i32_1 = arith.constant 0 : i32
    return %c0_i32, %c0_i32_0 : i32, i32
  }
  func.func @transform_6(%arg0: i32) -> (i32, i32) {
    %c0_i32 = arith.constant 0 : i32
    %c0_i32_0 = arith.constant 0 : i32
    %c0_i32_1 = arith.constant 0 : i32
    return %c0_i32, %c0_i32_0 : i32, i32
  }
  func.func @transform_7(%arg0: i32) -> (i32, i32) {
    %c0_i32 = arith.constant 0 : i32
    %c0_i32_0 = arith.constant 0 : i32
    return %arg0, %c0_i32 : i32, i32
  }
}

</mosaic_0001>

<bundles_post_ra>
// kernel: tpu_custom_call.1
= control target key start
LH: loop header
LB: loop body
LE: loop exit
PB: predicated region body
PF: predicated region fallthrough
CT: control target
= control target key end

     0   :  { %12 = vsyncpa [#allocation3], 0  ;;  %s543_s0 = inlined_call_operand.vmem [shape: bf16[16,8], index: 0, kind: input, shape index: {}]   ;;  %s544_s1 = inlined_call_operand.vmem [shape: bf16[8,128], index: 1, kind: input, shape index: {}]   ;;  %s545_s2 = inlined_call_operand.vmem [shape: f32[1,128], index: 2, kind: input, shape index: {}]   ;;  %s546_s3 = inlined_call_operand.hbm [shape: bf16[128,128], index: 3, kind: input, shape index: {}]   ;;  %s547_s4 = inlined_call_operand.vmem [shape: f32[1,128], index: 4, kind: input, shape index: {}]   ;;  %s548_s5 = inlined_call_operand.hbm [shape: bf16[128,128], index: 5, kind: input, shape index: {}]   ;;  %s549_s6 = inlined_call_operand.vmem [shape: f32[1,128], index: 6, kind: input, shape index: {}]   ;;  %s550_s7 = inlined_call_operand.hbm [shape: bf16[16,128], index: 7, kind: output, shape index: {}]  }
   0x1   :  { %13 = vsyncpa [#allocation6], 0 }
   0x2   :  { %14 = vsyncpa [#allocation4], 0  ;;  %s25_s26 = sshll.u32 %s546_s3, 4  ;;  %s465_s27 = smov [#allocation2]   ;;  %s26_s26 = int_to_ptr.hbm [resolvable:$true] %s25_s26 }
   0x3   :  { %s27_s28 = sshll.u32 %s465_s27, 4  ;;  %s40_s8 = sshll.u32 %s548_s5, 4  ;;  %s28_s28 = int_to_ptr.vmem [resolvable:$true] %s27_s28  ;;  %s41_s8 = int_to_ptr.hbm [resolvable:$true] %s40_s8 }
   0x4   :  { %s466_s9 = smov 64   ;;  %s467_s10 = smov 4  }
   0x5   :  { %33 = dma.hbm_to_vmem [thread:$0]  %s26_s26, 1024, %s28_s28, [#allocation3], %s466_s9, %s466_s9, %s467_s10  }
   0x6   :  { %s468_s11 = smov [#allocation5]  }
   0x7   :  { %s42_s12 = sshll.u32 %s468_s11, 4  ;;  %s43_s12 = int_to_ptr.vmem [resolvable:$true] %s42_s12 }
   0x8   :  { %48 = dma.hbm_to_vmem [thread:$0]  %s41_s8, 1024, %s43_s12, [#allocation6], %s466_s9, %s466_s9, %s467_s10  }
   0x9   :  { %459 = dma.done.wait [#allocation3], 1024  }
   0xa   :  { %460 = vsyncadd [#allocation3], 4294966272 }
   0xb   :  { %461 = dma.done.wait [#allocation6], 1024  }
   0xc   :  { %462 = vsyncadd [#allocation6], 4294966272  ;;  %vm76_vm0 = vcmask 1043456   ;;  %v62_v0 = vld [vmem:[%s544_s1] sm:$0xf]  ;;  %v365_v1 = vld [vmem:[#allocation2 + $0x38] sm:$0xff] }
   0xd   :  { %v78_v2 = vsel %vm76_vm0, %v62_v0, 0  ;;  %v357_v3 = vld [vmem:[%s543_s0] sm:$0xff]  ;;  %vm72_vm1 = vcmask 64512   ;;  %165 = vmatpush.bf16.msra.mxu1 %v365_v1  ;;  %v364_v4 = vld [vmem:[#allocation2 + $0x30] sm:$0xff]  ;;  %v363_v5 = vld [vmem:[#allocation2 + $0x28] sm:$0xff]  ;;  %s469_s18 = smov [#allocation7]  }
   0xe   :  { %87 = vmatpush.bf16.msra.mxu0 %v78_v2  ;;  %v362_v6 = vld [vmem:[#allocation2 + $0x20] sm:$0xff]  ;;  %v361_v7 = vld [vmem:[#allocation2 + $0x18] sm:$0xff]  ;;  %v360_v8 = vld [vmem:[#allocation2 + $0x10] sm:$0xff]  ;;  %s272_s19 = sshll.u32 %s469_s18, 4  ;;  %s274_s22 = sshll.u32 %s550_s7, 4  ;;  %s273_s19 = int_to_ptr.vmem [resolvable:$true] %s272_s19  ;;  %s275_s22 = int_to_ptr.hbm [resolvable:$true] %s274_s22 }
   0xf   :  { %v359_v9 = vld [vmem:[#allocation2 + $0x8] sm:$0xff]  ;;  %v358_v10 = vld [vmem:[#allocation2] sm:$0xff]  ;;  %v373_v11 = vld [vmem:[#allocation5 + $0x38] sm:$0xff] }
  0x10   :  { %250 = vmatpush.bf16.msra.mxu2 %v373_v11  ;;  %v372_v12 = vld [vmem:[#allocation5 + $0x30] sm:$0xff]  ;;  %v371_v13 = vld [vmem:[#allocation5 + $0x28] sm:$0xff]  ;;  %v370_v14 = vld [vmem:[#allocation5 + $0x20] sm:$0xff] }
  0x11   :  { %292 = vmatmul.msk.bf16.vlgmr.msra.gmra.mxu0 %vm72_vm1, %v357_v3  ;;  %166 = vmatpush.bf16.msra.mxu1 %v364_v4  ;;  %v384_v16 = vld [vmem:[%s545_s2] ss:$0 sm:$0xff]  ;;  %v369_v23 = vld [vmem:[#allocation5 + $0x18] sm:$0xff]  ;;  %v368_v24 = vld [vmem:[#allocation5 + $0x10] sm:$0xff] }
  0x12   :  { %v367_v25 = vld [vmem:[#allocation5 + $0x8] sm:$0xff]  ;;  %v366_v26 = vld [vmem:[#allocation5] sm:$0xff] }
  0x13   :  { %v385_v28 = vld [vmem:[%s547_s4] ss:$0 sm:$0xff] }
  0x14   :  { %251 = vmatpush.bf16.msra.mxu2 %v372_v12  ;;  %v386_v36 = vld [vmem:[%s549_s6] ss:$0 sm:$0xff] }
  0x15   :  { %167 = vmatpush.bf16.msra.mxu1 %v363_v5 }
  0x18   :  { %252 = vmatpush.bf16.msra.mxu2 %v371_v13 }
  0x19   :  { %168 = vmatpush.bf16.msra.mxu1 %v362_v6 }
  0x1c   :  { %253 = vmatpush.bf16.msra.mxu2 %v370_v14 }
  0x1d   :  { %169 = vmatpush.bf16.msra.mxu1 %v361_v7 }
  0x20   :  { %254 = vmatpush.bf16.msra.mxu2 %v369_v23 }
  0x21   :  { %170 = vmatpush.bf16.msra.mxu1 %v360_v8 }
  0x24   :  { %255 = vmatpush.bf16.msra.mxu2 %v368_v24 }
  0x25   :  { %171 = vmatpush.bf16.msra.mxu1 %v359_v9 }
  0x28   :  { %256 = vmatpush.bf16.msra.mxu2 %v367_v25 }
  0x29   :  { %172 = vmatpush.bf16.msra.mxu1 %v358_v10 }
  0x2c   :  { %257 = vmatpush.bf16.msra.mxu2 %v366_v26 }
  0x8e   :  { %v89_v15 = vpop.f32.mrf.mxu0 }
  0x8f   :  { %v90_v17 = vadd.f32 %v384_v16, %v89_v15 }
  0x91   :  { %v94_v20 = vmax.f32 %v90_v17, 0.0 }
  0x96   :  { %v91_v18 = vpop.f32.mrf.mxu0 }
  0x97   :  { %v92_v19 = vadd.f32 %v384_v16, %v91_v18 }
  0x99   :  { %v95_v21 = vmax.f32 %v92_v19, 0.0 }
  0x9b   :  { %v96_v22 = vpack.c.bf16 %v95_v21, %v94_v20 }
  0x9d   :  { %173 = vmatmul.bf16.vlgmr.msra.gmra.mxu1 %v96_v22 }
 0x11a   :  { %v174_v27 = vpop.f32.mrf.mxu1 }
 0x11b   :  { %v175_v29 = vadd.f32 %v385_v28, %v174_v27 }
 0x11d   :  { %v179_v32 = vmax.f32 %v175_v29, 0.0 }
 0x122   :  { %v176_v30 = vpop.f32.mrf.mxu1 }
 0x123   :  { %v177_v31 = vadd.f32 %v385_v28, %v176_v30 }
 0x125   :  { %v180_v33 = vmax.f32 %v177_v31, 0.0 }
 0x127   :  { %v181_v34 = vpack.c.bf16 %v180_v33, %v179_v32 }
 0x129   :  { %258 = vmatmul.bf16.vlgmr.msra.gmra.mxu2 %v181_v34 }
 0x1ac   :  { %v259_v35 = vpop.f32.mrf.mxu2 }
 0x1ad   :  { %v260_v38 = vadd.f32 %v386_v36, %v259_v35 }
 0x1b4   :  { %v261_v37 = vpop.f32.mrf.mxu2 }
 0x1b5   :  { %v262_v39 = vadd.f32 %v386_v36, %v261_v37 }
 0x1b7   :  { %v377_v40 = vpack.c.bf16 %v262_v39, %v260_v38 }
 0x1b9   :  { %378 = vst [vmem:[#allocation7] sm:$0xff] %v377_v40  }
 0x1ba   :  { %280 = dma.vmem_to_hbm [thread:$0]  %s273_s19, 128, %s275_s22, [#allocation4], %s466_s9, %s466_s9, %s467_s10  }
 0x1bb   :  { %463 = dma.done.wait [#allocation4], 128  }
 0x1bc   :  { %464 = vsyncadd [#allocation4], 4294967168 }
 0x1bd   :  { %285 = vsyncpa [#allocation3], 1 }
 0x1be   :  { %286 = vsyncpa [#allocation6], 1 }
 0x1bf   :  { %287 = vsyncpa [#allocation4], 1 }

</bundles_post_ra>
